<compile_context>
chip_gen: v7x
topology: tpu7x:2x2x1
jax: 0.10.0
libtpu: 0.0.40
codegen_flags: <defaults>
</compile_context>

<pallas_src>
import jax
import jax.numpy as jnp
from jax.experimental import pallas as pl
from jax.experimental.pallas import tpu as pltpu

hidden_size = 20
input_size = 10
output_size = 5


def rnn_kernel(x_ref, h0_ref, wxh_t_ref, whh_t_ref, bh_ref, whq_t_ref, bq_ref,
               y_ref, hlast_ref, h_all_ref):
    # Static shapes (trace-time Python ints).
    Bp, Hd = h0_ref.shape
    TB, _ = x_ref.shape
    T = TB // Bp

    # --- Hoisted input projection: one big matmul off the recurrence ---
    # (T*Bp, I) @ (I, Hd) + b_h
    xproj = (
        jnp.dot(x_ref[...], wxh_t_ref[...], preferred_element_type=jnp.float32)
        + bh_ref[...]
    )

    whh_t = whh_t_ref[...]
    H = h0_ref[...]

    # --- Recurrence: only H @ W_hh^T + tanh on the critical path ---
    # T is small and static -> fully unrolled straight-line code.
    for t in range(T):
        H = jnp.tanh(
            xproj[t * Bp:(t + 1) * Bp, :]
            + jnp.dot(H, whh_t, preferred_element_type=jnp.float32)
        )
        h_all_ref[pl.ds(t * Bp, Bp), :] = H

    hlast_ref[...] = H

    # --- Batched output projection: one matmul, one slab write ---
    y_ref[...] = (
        jnp.dot(h_all_ref[...], whq_t_ref[...], preferred_element_type=jnp.float32)
        + bq_ref[...]
    )


def rnn_forward(inputs, h0, W_xh, W_hh, b_h, W_hq, b_q):
    """inputs: (T, B, I) float32 (time-major, matching `for X in inputs`);
    h0: (B, Hd).  Returns (Y_cat: (T*B, O), (H_last: (B, Hd),))."""
    T, B, I = inputs.shape
    Hd = W_xh.shape[0]
    O = W_hq.shape[0]

    # Pad batch to a sublane multiple so all row slices are 8-aligned.
    Bp = max(8, ((B + 7) // 8) * 8)
    pad = Bp - B
    inputs_p = jnp.pad(inputs, ((0, 0), (0, pad), (0, 0)))
    h0_p = jnp.pad(h0, ((0, pad), (0, 0)))

    # Glue: flatten time into rows, pre-transpose weights, 2-D biases.
    x2d = inputs_p.reshape(T * Bp, I)     # (T*Bp, I)
    wxh_t = W_xh.T                        # (I, Hd)
    whh_t = W_hh.T                        # (Hd, Hd)
    whq_t = W_hq.T                        # (Hd, O)
    bh2 = b_h.reshape(1, Hd)
    bq2 = b_q.reshape(1, O)

    y2d, h_last_p = pl.pallas_call(
        rnn_kernel,
        out_shape=(
            jax.ShapeDtypeStruct((T * Bp, O), jnp.float32),
            jax.ShapeDtypeStruct((Bp, Hd), jnp.float32),
        ),
        scratch_shapes=[pltpu.VMEM((T * Bp, Hd), jnp.float32)],  # staged H_t's
    )(x2d, h0_p, wxh_t, whh_t, bh2, whq_t, bq2)

    # Strip batch padding; torch.cat(output, dim=0) -> (T*B, O).
    y = y2d.reshape(T, Bp, O)[:, :B, :].reshape(T * B, O)
    return y, (h_last_p[:B],)


def _reference(inputs, h0, W_xh, W_hh, b_h, W_hq, b_q):
    H = h0
    outs = []
    for t in range(inputs.shape[0]):
        X = inputs[t]
        H = jnp.tanh(X @ W_xh.T + H @ W_hh.T + b_h)
        outs.append(H @ W_hq.T + b_q)
    return jnp.concatenate(outs, axis=0), H


if __name__ == "__main__":
    key = jax.random.PRNGKey(0)
    ks = jax.random.split(key, 7)

    T, B = 6, 4  # small seq length and batch

    # Deterministic parameter init (randn-like), matching module shapes.
    W_xh = jax.random.normal(ks[0], (hidden_size, input_size), jnp.float32)
    W_hh = jax.random.normal(ks[1], (hidden_size, hidden_size), jnp.float32)
    b_h = jax.random.normal(ks[2], (hidden_size,), jnp.float32)
    W_hq = jax.random.normal(ks[3], (output_size, hidden_size), jnp.float32)
    b_q = jax.random.normal(ks[4], (output_size,), jnp.float32)

    inputs = jax.random.normal(ks[5], (T, B, input_size), jnp.float32)
    h0 = jax.random.normal(ks[6], (B, hidden_size), jnp.float32)

    y, (h_last,) = rnn_forward(inputs, h0, W_xh, W_hh, b_h, W_hq, b_q)
    jax.block_until_ready((y, h_last))

    # Correctness check against a pure-JAX reference.
    y_ref, h_ref = _reference(inputs, h0, W_xh, W_hh, b_h, W_hq, b_q)
    assert y.shape == (T * B, output_size)
    assert h_last.shape == (B, hidden_size)
    assert jnp.allclose(y, y_ref, atol=1e-4, rtol=1e-4)
    assert jnp.allclose(h_last, h_ref, atol=1e-4, rtol=1e-4)

    print("KERNEL_OK")
</pallas_src>

<mosaic_0001>
module attributes {stable_mosaic.version = 11 : i64} {
  func.func @rnn_kernel(%arg0: memref<48x10xf32, #tpu.memory_space<vmem>>, %arg1: memref<8x20xf32, #tpu.memory_space<vmem>>, %arg2: memref<10x20xf32, #tpu.memory_space<vmem>>, %arg3: memref<20x20xf32, #tpu.memory_space<vmem>>, %arg4: memref<1x20xf32, #tpu.memory_space<vmem>>, %arg5: memref<20x5xf32, #tpu.memory_space<vmem>>, %arg6: memref<1x5xf32, #tpu.memory_space<vmem>>, %arg7: memref<48x5xf32, #tpu.memory_space<vmem>>, %arg8: memref<8x20xf32, #tpu.memory_space<vmem>>, %arg9: memref<48x20xf32, #tpu.memory_space<vmem>>) attributes {dimension_semantics = [], scalar_prefetch = 0 : i64, scratch_operands = 1 : i64, tpu.core_type = #tpu.core_type<tc>} {
    %c0 = arith.constant 0 : index
    %c0_0 = arith.constant 0 : index
    %0 = vector.load %arg0[%c0, %c0_0] : memref<48x10xf32, #tpu.memory_space<vmem>>, vector<48x10xf32>
    %c0_1 = arith.constant 0 : index
    %c0_2 = arith.constant 0 : index
    %1 = vector.load %arg2[%c0_1, %c0_2] : memref<10x20xf32, #tpu.memory_space<vmem>>, vector<10x20xf32>
    %cst = arith.constant dense<0.000000e+00> : vector<48x20xf32>
    %2 = tpu.matmul %0, %1, %cst {dimension_numbers = #tpu.dot_dimension_numbers<[1], [0], [0], [1], [0, 0, 1, 1], [], []>} : vector<48x10xf32>, vector<10x20xf32>, vector<48x20xf32> -> vector<48x20xf32>
    %c0_3 = arith.constant 0 : index
    %c0_4 = arith.constant 0 : index
    %3 = vector.load %arg4[%c0_3, %c0_4] : memref<1x20xf32, #tpu.memory_space<vmem>>, vector<1x20xf32>
    %4 = vector.broadcast %3 : vector<1x20xf32> to vector<48x20xf32>
    %5 = arith.addf %2, %4 : vector<48x20xf32>
    %c0_5 = arith.constant 0 : index
    %c0_6 = arith.constant 0 : index
    %6 = vector.load %arg3[%c0_5, %c0_6] : memref<20x20xf32, #tpu.memory_space<vmem>>, vector<20x20xf32>
    %c0_7 = arith.constant 0 : index
    %c0_8 = arith.constant 0 : index
    %7 = vector.load %arg1[%c0_7, %c0_8] : memref<8x20xf32, #tpu.memory_space<vmem>>, vector<8x20xf32>
    %8 = vector.extract_strided_slice %5 {offsets = [0, 0], sizes = [8, 20], strides = [1, 1]} : vector<48x20xf32> to vector<8x20xf32>
    %cst_9 = arith.constant dense<0.000000e+00> : vector<8x20xf32>
    %9 = tpu.matmul %7, %6, %cst_9 {dimension_numbers = #tpu.dot_dimension_numbers<[1], [0], [0], [1], [0, 0, 1, 1], [], []>} : vector<8x20xf32>, vector<20x20xf32>, vector<8x20xf32> -> vector<8x20xf32>
    %10 = arith.addf %8, %9 : vector<8x20xf32>
    %11 = math.tanh %10 : vector<8x20xf32>
    %c0_10 = arith.constant 0 : index
    %c0_11 = arith.constant 0 : index
    %12 = vector.load %arg9[%c0_10, %c0_11] : memref<48x20xf32, #tpu.memory_space<vmem>>, vector<8x20xf32>
    tpu.vector_store %arg9[%c0_10, %c0_11], %11 {strides = array<i32>} : memref<48x20xf32, #tpu.memory_space<vmem>>, vector<8x20xf32>,
    %13 = vector.extract_strided_slice %5 {offsets = [8, 0], sizes = [8, 20], strides = [1, 1]} : vector<48x20xf32> to vector<8x20xf32>
    %cst_12 = arith.constant dense<0.000000e+00> : vector<8x20xf32>
    %14 = tpu.matmul %11, %6, %cst_12 {dimension_numbers = #tpu.dot_dimension_numbers<[1], [0], [0], [1], [0, 0, 1, 1], [], []>} : vector<8x20xf32>, vector<20x20xf32>, vector<8x20xf32> -> vector<8x20xf32>
    %15 = arith.addf %13, %14 : vector<8x20xf32>
    %16 = math.tanh %15 : vector<8x20xf32>
    %c8 = arith.constant 8 : index
    %c0_13 = arith.constant 0 : index
    %17 = vector.load %arg9[%c8, %c0_13] : memref<48x20xf32, #tpu.memory_space<vmem>>, vector<8x20xf32>
    tpu.vector_store %arg9[%c8, %c0_13], %16 {strides = array<i32>} : memref<48x20xf32, #tpu.memory_space<vmem>>, vector<8x20xf32>,
    %18 = vector.extract_strided_slice %5 {offsets = [16, 0], sizes = [8, 20], strides = [1, 1]} : vector<48x20xf32> to vector<8x20xf32>
    %cst_14 = arith.constant dense<0.000000e+00> : vector<8x20xf32>
    %19 = tpu.matmul %16, %6, %cst_14 {dimension_numbers = #tpu.dot_dimension_numbers<[1], [0], [0], [1], [0, 0, 1, 1], [], []>} : vector<8x20xf32>, vector<20x20xf32>, vector<8x20xf32> -> vector<8x20xf32>
    %20 = arith.addf %18, %19 : vector<8x20xf32>
    %21 = math.tanh %20 : vector<8x20xf32>
    %c16 = arith.constant 16 : index
    %c0_15 = arith.constant 0 : index
    %22 = vector.load %arg9[%c16, %c0_15] : memref<48x20xf32, #tpu.memory_space<vmem>>, vector<8x20xf32>
    tpu.vector_store %arg9[%c16, %c0_15], %21 {strides = array<i32>} : memref<48x20xf32, #tpu.memory_space<vmem>>, vector<8x20xf32>,
    %23 = vector.extract_strided_slice %5 {offsets = [24, 0], sizes = [8, 20], strides = [1, 1]} : vector<48x20xf32> to vector<8x20xf32>
    %cst_16 = arith.constant dense<0.000000e+00> : vector<8x20xf32>
    %24 = tpu.matmul %21, %6, %cst_16 {dimension_numbers = #tpu.dot_dimension_numbers<[1], [0], [0], [1], [0, 0, 1, 1], [], []>} : vector<8x20xf32>, vector<20x20xf32>, vector<8x20xf32> -> vector<8x20xf32>
    %25 = arith.addf %23, %24 : vector<8x20xf32>
    %26 = math.tanh %25 : vector<8x20xf32>
    %c24 = arith.constant 24 : index
    %c0_17 = arith.constant 0 : index
    %27 = vector.load %arg9[%c24, %c0_17] : memref<48x20xf32, #tpu.memory_space<vmem>>, vector<8x20xf32>
    tpu.vector_store %arg9[%c24, %c0_17], %26 {strides = array<i32>} : memref<48x20xf32, #tpu.memory_space<vmem>>, vector<8x20xf32>,
    %28 = vector.extract_strided_slice %5 {offsets = [32, 0], sizes = [8, 20], strides = [1, 1]} : vector<48x20xf32> to vector<8x20xf32>
    %cst_18 = arith.constant dense<0.000000e+00> : vector<8x20xf32>
    %29 = tpu.matmul %26, %6, %cst_18 {dimension_numbers = #tpu.dot_dimension_numbers<[1], [0], [0], [1], [0, 0, 1, 1], [], []>} : vector<8x20xf32>, vector<20x20xf32>, vector<8x20xf32> -> vector<8x20xf32>
    %30 = arith.addf %28, %29 : vector<8x20xf32>
    %31 = math.tanh %30 : vector<8x20xf32>
    %c32 = arith.constant 32 : index
    %c0_19 = arith.constant 0 : index
    %32 = vector.load %arg9[%c32, %c0_19] : memref<48x20xf32, #tpu.memory_space<vmem>>, vector<8x20xf32>
    tpu.vector_store %arg9[%c32, %c0_19], %31 {strides = array<i32>} : memref<48x20xf32, #tpu.memory_space<vmem>>, vector<8x20xf32>,
    %33 = vector.extract_strided_slice %5 {offsets = [40, 0], sizes = [8, 20], strides = [1, 1]} : vector<48x20xf32> to vector<8x20xf32>
    %cst_20 = arith.constant dense<0.000000e+00> : vector<8x20xf32>
    %34 = tpu.matmul %31, %6, %cst_20 {dimension_numbers = #tpu.dot_dimension_numbers<[1], [0], [0], [1], [0, 0, 1, 1], [], []>} : vector<8x20xf32>, vector<20x20xf32>, vector<8x20xf32> -> vector<8x20xf32>
    %35 = arith.addf %33, %34 : vector<8x20xf32>
    %36 = math.tanh %35 : vector<8x20xf32>
    %c40 = arith.constant 40 : index
    %c0_21 = arith.constant 0 : index
    %37 = vector.load %arg9[%c40, %c0_21] : memref<48x20xf32, #tpu.memory_space<vmem>>, vector<8x20xf32>
    tpu.vector_store %arg9[%c40, %c0_21], %36 {strides = array<i32>} : memref<48x20xf32, #tpu.memory_space<vmem>>, vector<8x20xf32>,
    %c0_22 = arith.constant 0 : index
    %c0_23 = arith.constant 0 : index
    %38 = vector.load %arg8[%c0_22, %c0_23] : memref<8x20xf32, #tpu.memory_space<vmem>>, vector<8x20xf32>
    tpu.vector_store %arg8[%c0_22, %c0_23], %36 {strides = array<i32>} : memref<8x20xf32, #tpu.memory_space<vmem>>, vector<8x20xf32>,
    %c0_24 = arith.constant 0 : index
    %c0_25 = arith.constant 0 : index
    %39 = vector.load %arg9[%c0_24, %c0_25] : memref<48x20xf32, #tpu.memory_space<vmem>>, vector<48x20xf32>
    %c0_26 = arith.constant 0 : index
    %c0_27 = arith.constant 0 : index
    %40 = vector.load %arg5[%c0_26, %c0_27] : memref<20x5xf32, #tpu.memory_space<vmem>>, vector<20x5xf32>
    %cst_28 = arith.constant dense<0.000000e+00> : vector<48x5xf32>
    %41 = tpu.matmul %39, %40, %cst_28 {dimension_numbers = #tpu.dot_dimension_numbers<[1], [0], [0], [1], [0, 0, 1, 1], [], []>} : vector<48x20xf32>, vector<20x5xf32>, vector<48x5xf32> -> vector<48x5xf32>
    %c0_29 = arith.constant 0 : index
    %c0_30 = arith.constant 0 : index
    %42 = vector.load %arg6[%c0_29, %c0_30] : memref<1x5xf32, #tpu.memory_space<vmem>>, vector<1x5xf32>
    %43 = vector.broadcast %42 : vector<1x5xf32> to vector<48x5xf32>
    %44 = arith.addf %41, %43 : vector<48x5xf32>
    %c0_31 = arith.constant 0 : index
    %c0_32 = arith.constant 0 : index
    %45 = vector.load %arg7[%c0_31, %c0_32] : memref<48x5xf32, #tpu.memory_space<vmem>>, vector<48x5xf32>
    tpu.vector_store %arg7[%c0_31, %c0_32], %44 {strides = array<i32>} : memref<48x5xf32, #tpu.memory_space<vmem>>, vector<48x5xf32>,
    return
  }
}

</mosaic_0001>

<bundles_post_ra>
// kernel: tpu_custom_call.1
= control target key start
LH: loop header
LB: loop body
LE: loop exit
PB: predicated region body
PF: predicated region fallthrough
CT: control target
= control target key end

     0   :  { %vm63_vm0 = vcmask 1041408   ;;  %vm1005_vm1 = vmmov 1   ;;  %v1006_v3 = vmov 0.0|0.0   ;;  %vm44_vm3 = vcmask 80896   ;;  %s1223_s0 = inlined_call_operand.vmem [shape: f32[48,10], index: 0, kind: input, shape index: {}]   ;;  %s1224_s1 = inlined_call_operand.vmem [shape: f32[8,20], index: 1, kind: input, shape index: {}]   ;;  %s1225_s2 = inlined_call_operand.vmem [shape: f32[10,20], index: 2, kind: input, shape index: {}]   ;;  %s1226_s3 = inlined_call_operand.vmem [shape: f32[20,20], index: 3, kind: input, shape index: {}]   ;;  %s1227_s4 = inlined_call_operand.vmem [shape: f32[1,20], index: 4, kind: input, shape index: {}]   ;;  %s1228_s5 = inlined_call_operand.vmem [shape: f32[20,5], index: 5, kind: input, shape index: {}]   ;;  %s1229_s6 = inlined_call_operand.vmem [shape: f32[1,5], index: 6, kind: input, shape index: {}]   ;;  %s1230_s7 = inlined_call_operand.vmem [shape: f32[48,5], index: 7, kind: output, shape index: {0}]   ;;  %s1231_s8 = inlined_call_operand.hbm [shape: f32[8,20], index: 8, kind: output, shape index: {1}]  }
   0x1   :  { %v35_v0 = vld [vmem:[%s1225_s2] sm:$0xff]  ;;  %v36_v1 = vld [vmem:[%s1225_s2 + $0x8] sm:$0x3]  ;;  %vm937_vm2 = vmpackc.low %vm63_vm0, %vm1005_vm1  ;;  %942 = vmatprep.subr.bf16.mxu1 %v1006_v3 }
   0x2   :  { %v936_v2 = vpack.c.bf16 %v36_v1, %v35_v0  ;;  %v162_v4 = vld [vmem:[%s1226_s3] sm:$0xff]  ;;  %v163_v5 = vld [vmem:[%s1226_s3 + $0x8] sm:$0xff] }
   0x3   :  { %v1068_v6 = vpack.c.bf16 %v163_v5, %v162_v4  ;;  %v29_v7 = vld [vmem:[%s1223_s0] sm:$0xff] }
   0x4   :  { %938 = vmatprep.subr.msk.bf16.mxu0 %vm937_vm2, %v936_v2  ;;  %858 = vmatprep.mubr.msk.f32.mxu0 %vm44_vm3, %v29_v7 }
   0x5   :  { %14 = vsyncpa [#allocation4], 0  ;;  %941 = vmatpush3.bf16.msk.msra.mxu0 %vm937_vm2, %v936_v2  ;;  %944 = vmatpush3.bf16.msra.mxu1 %v1068_v6  ;;  %v30_v8 = vld [vmem:[%s1223_s0 + $0x8] sm:$0xff]  ;;  %v1007_v9 = vmov 0.0   ;;  %v1082_v10 = vld [vmem:[%s1226_s3 + $0x10] sm:$0xf] }
   0x6   :  { %871 = vmatprep.subr.mxu1 %v1007_v9  ;;  %vm170_vm4 = vcmask 1043456   ;;  %vm1008_vm5 = vmmov 0   ;;  %v165_v11 = vld [vmem:[%s1224_s1] sm:$0xff]  ;;  %vm166_vm6 = vcmask 162816   ;;  %954 = vmatprep.subr.bf16.mxu0 %v1006_v3  ;;  %v31_v20 = vld [vmem:[%s1223_s0 + $0x10] sm:$0xff]  ;;  %v32_v21 = vld [vmem:[%s1223_s0 + $0x18] sm:$0xff] }
   0x7   :  { %873 = vmatprep.mubr.msk.f32.mxu1 %vm1008_vm5, %v1007_v9  ;;  %v1109_v12 = vld [vmem:[%s1227_s4] ss:$0 sm:$0xff]  ;;  %v34_v35 = vld [vmem:[%s1223_s0 + $0x28] sm:$0xff]  ;;  %v636_v44 = vld [vmem:[%s1228_s5 + $0x10] sm:$0xf]  ;;  %vm760_vm7 = vcmask 39936  }
   0x8   :  { %859 = vmatmul.mubr.msk.f32.vlgmr.msra.gmra.mrb[0].mxu0 %vm44_vm3, %v30_v8  ;;  %v33_v34 = vld [vmem:[%s1223_s0 + $0x20] sm:$0xff]  ;;  %v635_v37 = vld [vmem:[%s1228_s5 + $0x8] sm:$0xff]  ;;  %s1009_s17 = smov [#allocation3]  }
   0x9   :  { %872 = vmatpush3.msk.msra.mxu1 %vm170_vm4, %v1082_v10  ;;  %956 = vmatpush3.bf16.msra.mxu0 %v1068_v6  ;;  %v634_v36 = vld [vmem:[%s1228_s5] sm:$0xff]  ;;  %s775_s18 = sshll.u32 %s1009_s17, 4  ;;  %s776_s18 = int_to_ptr.vmem [resolvable:$true] %s775_s18 }
   0xa   :  { %874 = vmatmul.mubr.msk.f32.vlgmr.msra.gmra.mrb[0].mxu1 %vm166_vm6, %v165_v11  ;;  %945 = vmatprep.subr.bf16.mxu1 %v1006_v3  ;;  %v960_v38 = vpack.c.bf16 %v635_v37, %v634_v36  ;;  %v805_v55 = vld [vmem:[%s1229_s6] ss:$0 sm:$0xff]  ;;  %s981_s19 = scalar_lea.vmem %s776_s18, 128  ;;  %p986_p1 = scmp.lt.s32.totalorder %s776_s18, %s776_s18 }
   0xb   :  { %947 = vmatpush3.bf16.msra.mxu1 %v1068_v6  ;;  %882 = vmatprep.mubr.msk.f32.mxu1 %vm1008_vm5, %v1007_v9  ;;  %p982_p0 = scmp.ne.s32.totalorder %s776_s18, %s981_s19  ;;  %p987_p2 = scmp.lt.s32.totalorder %s981_s19, %s981_s19 }
   0xc   :  { %880 = vmatprep.subr.mxu1 %v1007_v9  ;;  %907 = vmatprep.subr.mxu0 %v1007_v9 }
   0xd   :  { %908 = vmatpush3.msk.msra.mxu0 %vm170_vm4, %v1082_v10  ;;  %861 = vmatprep.mubr.msk.f32.mxu0 %vm44_vm3, %v31_v20  ;;  %p988_p3 = por %p987_p2, %p986_p1 }
   0xe   :  { %862 = vmatmul.mubr.msk.f32.gmra.mrb[2].mxu0 %vm44_vm3, %v32_v21  ;;  %961 = vmatprep.subr.bf16.mxu0 %v960_v38 }
   0xf   :  { %881 = vmatpush3.msk.msra.mxu1 %vm170_vm4, %v1082_v10  ;;  %864 = vmatprep.mubr.msk.f32.mxu0 %vm44_vm3, %v33_v34  ;;  %p989_p4 = pnand %p988_p3, %p982_p0 }
  0x10   :  { %948 = vmatprep.subr.bf16.mxu1 %v1006_v3 }
  0x12   :  { %865 = vmatmul.mubr.msk.f32.gmra.mrb[4].mxu0 %vm44_vm3, %v34_v35 }
  0x13   :  { %909 = vmatprep.mubr.msk.f32.mxu0 %vm1008_vm5, %v1007_v9 }
  0xdb   :  { %v860_v13 = vpop.f32.mrb[0].mxu0 }
  0xdc   :  { %v133_v14 = vpop.f32.mrb[1].mxu0  ;;  %v139_v22 = vadd.f32 %v860_v13, %v1109_v12 }
  0xdd   :  { %v134_v15 = vadd.f32 %v1109_v12, %v133_v14  ;;  %v240_v16 = vpop.f32.mrb[0].mxu1 }
  0xde   :  { %v875_v17 = vpop.f32.mrb[1].mxu1 }
  0xdf   :  { %v244_v18 = vadd.f32 %v240_v16, %v134_v15 }
  0xe1   :  { %969 = vtanh.f32 %v244_v18  ;;  %v863_v27 = vpop.f32.mrb[2].mxu0 }
  0xe2   :  { %v143_v28 = vpop.f32.mrb[3].mxu0  ;;  %v149_v39 = vadd.f32 %v863_v27, %v1109_v12 }
  0xe3   :  { %v144_v29 = vadd.f32 %v1109_v12, %v143_v28 }
  0xe5   :  { %v866_v49 = vpop.f32.mrb[4].mxu0 }
  0xe6   :  { %v153_v50 = vpop.f32.mrb[5].mxu0  ;;  %v159_v2 = vadd.f32 %v866_v49, %v1109_v12 }
  0xe7   :  { %v154_v51 = vadd.f32 %v1109_v12, %v153_v50 }
  0xeb   :  { %v970_v19 = vpop.eup %969 }
  0xec   :  { %246 = vst.msk [vmem:[#allocation2] sm:$0xff] %vm166_vm6, %v970_v19  ;;  %883 = vmatmul.mubr.msk.f32.vlgmr.msra.gmra.mrb[2].mxu1 %vm166_vm6, %v970_v19 }
  0xed   :  { %950 = vmatpush3.bf16.msra.mxu1 %v1068_v6  ;;  %891 = vmatprep.mubr.msk.f32.mxu1 %vm1008_vm5, %v1007_v9 }
  0xee   :  { %889 = vmatprep.subr.mxu1 %v1007_v9 }
  0xf1   :  { %890 = vmatpush3.msk.msra.mxu1 %vm170_vm4, %v1082_v10 }
  0xf2   :  { %951 = vmatprep.subr.bf16.mxu1 %v1006_v3 }
  0xf3   :  { %v628_v45 = vld [vmem:[#allocation2] sm:$0xff] }
 0x1bf   :  { %v316_v23 = vpop.f32.mrb[2].mxu1 }
 0x1c0   :  { %v320_v24 = vadd.f32 %v316_v23, %v139_v22  ;;  %v884_v25 = vpop.f32.mrb[3].mxu1 }
 0x1c2   :  { %971 = vtanh.f32 %v320_v24 }
 0x1cc   :  { %v972_v26 = vpop.eup %971 }
 0x1cd   :  { %322 = vst.msk [vmem:[#allocation2 + $0x8] sm:$0xff] %vm166_vm6, %v972_v26  ;;  %892 = vmatmul.mubr.msk.f32.vlgmr.msra.gmra.mrb[4].mxu1 %vm166_vm6, %v972_v26 }
 0x1ce   :  { %953 = vmatpush3.bf16.msra.mxu1 %v1068_v6  ;;  %900 = vmatprep.mubr.msk.f32.mxu1 %vm1008_vm5, %v1007_v9 }
 0x1cf   :  { %898 = vmatprep.subr.mxu1 %v1007_v9 }
 0x1d2   :  { %899 = vmatpush3.msk.msra.mxu1 %vm170_vm4, %v1082_v10 }
 0x1d3   :  { %957 = vmatprep.subr.bf16.mxu1 %v1006_v3 }
 0x1d4   :  { %v629_v46 = vld [vmem:[#allocation2 + $0x8] sm:$0xff] }
 0x2a0   :  { %v392_v30 = vpop.f32.mrb[4].mxu1 }
 0x2a1   :  { %v396_v31 = vadd.f32 %v392_v30, %v144_v29  ;;  %v893_v32 = vpop.f32.mrb[5].mxu1 }
 0x2a3   :  { %973 = vtanh.f32 %v396_v31 }
 0x2ad   :  { %v974_v33 = vpop.eup %973 }
 0x2ae   :  { %398 = vst.msk [vmem:[#allocation2 + $0x10] sm:$0xff] %vm166_vm6, %v974_v33  ;;  %901 = vmatmul.mubr.msk.f32.vlgmr.msra.gmra.mrb[6].mxu1 %vm166_vm6, %v974_v33 }
 0x2af   :  { %959 = vmatpush3.bf16.msra.mxu1 %v1068_v6  ;;  %918 = vmatprep.mubr.msk.f32.mxu1 %vm1008_vm5, %v1007_v9 }
 0x2b0   :  { %916 = vmatprep.subr.mxu1 %v1007_v9 }
 0x2b3   :  { %917 = vmatpush3.msk.msra.mxu1 %vm170_vm4, %v1082_v10 }
 0x2b5   :  { %v630_v47 = vld [vmem:[#allocation2 + $0x10] sm:$0xff] }
 0x381   :  { %v468_v40 = vpop.f32.mrb[6].mxu1 }
 0x382   :  { %v472_v41 = vadd.f32 %v468_v40, %v149_v39  ;;  %v902_v42 = vpop.f32.mrb[7].mxu1 }
 0x384   :  { %975 = vtanh.f32 %v472_v41 }
 0x38e   :  { %v976_v43 = vpop.eup %975 }
 0x38f   :  { %474 = vst.msk [vmem:[#allocation2 + $0x18] sm:$0xff] %vm166_vm6, %v976_v43  ;;  %910 = vmatmul.mubr.msk.f32.vlgmr.msra.gmra.mrb[6].mxu0 %vm166_vm6, %v976_v43 }
 0x390   :  { %963 = vmatpush3.bf16.msra.mxu0 %v960_v38  ;;  %927 = vmatprep.mubr.msk.f32.mxu0 %vm166_vm6, %v628_v45 }
 0x391   :  { %925 = vmatprep.subr.msk.mxu0 %vm170_vm4, %v636_v44 }
 0x394   :  { %926 = vmatpush3.msk.msra.mxu0 %vm170_vm4, %v636_v44 }
 0x395   :  { %928 = vmatmul.mubr.msk.f32.vlgmr.msra.gmra.mrb[8].mxu0 %vm166_vm6, %v629_v46 }
 0x396   :  { %930 = vmatprep.mubr.msk.f32.mxu0 %vm166_vm6, %v630_v47  ;;  %v631_v48 = vld [vmem:[#allocation2 + $0x18] sm:$0xff] }
 0x399   :  { %931 = vmatmul.mubr.msk.f32.gmra.mrb[10].mxu0 %vm166_vm6, %v631_v48 }
 0x462   :  { %v544_v52 = vpop.f32.mrb[6].mxu0 }
 0x463   :  { %v548_v53 = vadd.f32 %v544_v52, %v154_v51  ;;  %v911_v54 = vpop.f32.mrb[7].mxu0 }
 0x465   :  { %977 = vtanh.f32 %v548_v53 }
 0x468   :  { %v929_v56 = vpop.f32.mrb[8].mxu0 }
 0x469   :  { %v737_v57 = vadd.f32 %v929_v56, %v805_v55  ;;  %v731_v58 = vpop.f32.mrb[9].mxu0 }
 0x46a   :  { %v732_v59 = vadd.f32 %v805_v55, %v731_v58 }
 0x46b   :  { %762 = vst.msk [vmem:[%s1230_s7 + $0x8] sm:$0xff] %vm760_vm7, %v737_v57 }
 0x46c   :  { %761 = vst.msk [vmem:[%s1230_s7] sm:$0xff] %vm760_vm7, %v732_v59  ;;  %v932_v60 = vpop.f32.mrb[10].mxu0 }
 0x46d   :  { %v747_v61 = vadd.f32 %v932_v60, %v805_v55  ;;  %v741_v62 = vpop.f32.mrb[11].mxu0 }
 0x46e   :  { %v742_v63 = vadd.f32 %v805_v55, %v741_v62 }
 0x46f   :  { %v978_v0 = vpop.eup %977  ;;  %764 = vst.msk [vmem:[%s1230_s7 + $0x18] sm:$0xff] %vm760_vm7, %v747_v61 }
 0x470   :  { %550 = vst.msk [vmem:[#allocation2 + $0x20] sm:$0xff] %vm166_vm6, %v978_v0  ;;  %919 = vmatmul.mubr.msk.f32.vlgmr.msra.gmra.mrb[8].mxu1 %vm166_vm6, %v978_v0 }
 0x471   :  { %763 = vst.msk [vmem:[%s1230_s7 + $0x10] sm:$0xff] %vm760_vm7, %v742_v63 }
 0x477   :  { %v632_v1 = vld [vmem:[#allocation2 + $0x20] sm:$0xff] }
 0x478   :  { %933 = vmatprep.mubr.msk.f32.mxu0 %vm166_vm6, %v632_v1 }
 0x543   :  { %v620_v3 = vpop.f32.mrb[8].mxu1 }
 0x544   :  { %v624_v4 = vadd.f32 %v620_v3, %v159_v2  ;;  %v920_v5 = vpop.f32.mrb[9].mxu1 }
 0x546   :  { %979 = vtanh.f32 %v624_v4 }
 0x550   :  { %v980_v6 = vpop.eup %979 }
 0x551   :  { %626 = vst.msk [vmem:[#allocation2 + $0x28] sm:$0xff] %vm166_vm6, %v980_v6  ;;  %627 = vst.msk [vmem:[#allocation3] sm:$0xff] %vm166_vm6, %v980_v6 }
 0x558   :  { %v633_v7 = vld [vmem:[#allocation2 + $0x28] sm:$0xff] }
 0x559   :  { %934 = vmatmul.mubr.msk.f32.gmra.mrb[12].mxu0 %vm166_vm6, %v633_v7 }
 0x55a   :  { %992 = shalt.err (!%p989_p4)
}
 0x55b   :  { %s993_s4 = scalar_lea.hbm %s1231_s8, 128 }
 0x55c   :  { %p994_p5 = scmp.ne.s32.totalorder %s1231_s8, %s993_s4  ;;  %p997_p6 = scmp.lt.u32.totalorder %s993_s4, %s1231_s8 }
 0x55e   :  { %p999_p7 = pnand %p997_p6, %p994_p5 }
 0x560   :  { %1002 = shalt.err (!%p999_p7)
}
 0x561   :  { %778 = dma.vmem_to_hbm [thread:$0]  %s776_s18, 128, %s1231_s8, [#allocation4]  }
 0x62c   :  { %v935_v8 = vpop.f32.mrb[12].mxu0 }
 0x62d   :  { %v757_v9 = vadd.f32 %v935_v8, %v805_v55  ;;  %v751_v10 = vpop.f32.mrb[13].mxu0 }
 0x62e   :  { %v752_v11 = vadd.f32 %v805_v55, %v751_v10 }
 0x62f   :  { %766 = vst.msk [vmem:[%s1230_s7 + $0x28] sm:$0xff] %vm760_vm7, %v757_v9 }
 0x630   :  { %765 = vst.msk [vmem:[%s1230_s7 + $0x20] sm:$0xff] %vm760_vm7, %v752_v11 }
 0x631   :  { %1003 = dma.done.wait [#allocation4], 128  }
 0x632   :  { %1004 = vsyncadd [#allocation4], 4294967168 }
 0x633   :  { %784 = vsyncpa [#allocation4], 1 }

</bundles_post_ra>
